<compile_context>
chip_gen: v5e
topology: v5e:2x2
jax: 0.10.0
libtpu: 0.0.40
codegen_flags: <defaults>
</compile_context>

<pallas_src>
import functools

import jax
import jax.numpy as jnp
from jax.experimental import pallas as pl
from jax.experimental.pallas import tpu as pltpu


def char_lstm_kernel(x_ref, h0_ref, c0_ref, wih_t_ref, whh_t_ref, b_ref,
                     wfc_t_ref, bfc_ref,
                     out_ref, hn_ref, cn_ref,
                     h_all_sc):
    """Whole CharLSTM forward in one invocation (everything VMEM-resident).

    Shapes seen by the kernel:
      x_ref    : (T*B, H)  embedded input, time-major rows (row = t*B + b)
      h0_ref   : (B, H)    initial hidden state
      c0_ref   : (B, H)    initial cell state
      wih_t_ref: (H, 4H)   pre-transposed weight_ih_l0
      whh_t_ref: (H, 4H)   pre-transposed weight_hh_l0
      b_ref    : (1, 4H)   b_ih + b_hh combined
      wfc_t_ref: (H, O)    pre-transposed fc weight
      bfc_ref  : (1, O)    fc bias
      out_ref  : (T*B, O)  fc(h_t), time-major rows
      hn_ref   : (B, H)    final hidden state
      cn_ref   : (B, H)    final cell state
      h_all_sc : (T*B, H)  f32 VMEM slab of per-step hiddens (batched fc input)
    """
    B, H = h0_ref.shape
    T = x_ref.shape[0] // B

    # (1) Input projection hoisted out of the recurrence: one batched
    #     (T*B, H) @ (H, 4H) MXU matmul, bias broadcast-added once.
    gx = jnp.dot(x_ref[...], wih_t_ref[...],
                 preferred_element_type=jnp.float32) + b_ref[...]   # (T*B, 4H)

    whh_t = whh_t_ref[...]
    h = h0_ref[...]
    c = c0_ref[...]

    # (2) Serial recurrence, statically unrolled (T is a small Python int).
    #     Only one (B, H) @ (H, 4H) matmul per step on the critical path.
    for t in range(T):
        gates = gx[t * B:(t + 1) * B, :] + jnp.dot(
            h, whh_t, preferred_element_type=jnp.float32)           # (B, 4H)
        # PyTorch gate order: [i, f, g, o]
        i_g = jax.nn.sigmoid(gates[:, 0 * H:1 * H])
        f_g = jax.nn.sigmoid(gates[:, 1 * H:2 * H])
        g_g = jnp.tanh(gates[:, 2 * H:3 * H])
        o_g = jax.nn.sigmoid(gates[:, 3 * H:4 * H])
        c = f_g * c + i_g * g_g
        h = o_g * jnp.tanh(c)
        h_all_sc[t * B:(t + 1) * B, :] = h

    # (3) Final states written exactly once.
    hn_ref[...] = h
    cn_ref[...] = c

    # (4) Batched fc over the whole hidden slab: one MXU matmul, one store.
    out_ref[...] = jnp.dot(h_all_sc[...], wfc_t_ref[...],
                           preferred_element_type=jnp.float32) + bfc_ref[...]


def char_lstm_pallas(params, input_ids, hidden):
    """Pallas implementation of CharLSTM.forward (num_layers == 1).

    input_ids : (B, T) int32 token ids
    hidden    : tuple of (1, B, H) float32 arrays (h0, c0)
    returns   : (logits (B*T, O), (h_n (1,B,H), c_n (1,B,H)))
    """
    # TODO(synk): kernel hard-codes num_layers=1 (the module's default).
    h0 = hidden[0][0]                      # (B, H)
    c0 = hidden[1][0]

    B, T = input_ids.shape
    H = params["embed"].shape[1]
    O = params["w_fc"].shape[0]

    # glue: embedding gather done directly in time-major row order
    # (row = t*B + b) by gathering with transposed ids -> no extra transpose.
    x_tm = params["embed"][input_ids.T].reshape(T * B, H)   # (T*B, H)

    # pre-transpose weights ONCE so the kernel consumes natural (K, N) layout.
    wih_t = params["w_ih"].T                                # (H, 4H)
    whh_t = params["w_hh"].T                                # (H, 4H)
    wfc_t = params["w_fc"].T                                # (H, O)
    b_comb = (params["b_ih"] + params["b_hh"]).reshape(1, 4 * H)
    b_fc = params["b_fc"].reshape(1, O)

    vmem = pl.BlockSpec(memory_space=pltpu.MemorySpace.VMEM)

    out_tm, h_n, c_n = pl.pallas_call(
        char_lstm_kernel,
        out_shape=(
            jax.ShapeDtypeStruct((T * B, O), jnp.float32),
            jax.ShapeDtypeStruct((B, H), jnp.float32),
            jax.ShapeDtypeStruct((B, H), jnp.float32),
        ),
        in_specs=[vmem] * 8,
        out_specs=(vmem, vmem, vmem),
        scratch_shapes=[pltpu.VMEM((T * B, H), jnp.float32)],   # hidden slab
    )(x_tm, h0, c0, wih_t, whh_t, b_comb, wfc_t, b_fc)

    # glue: time-major rows (t*B + b) -> batch-major (b*T + t) to match
    # PyTorch's output.reshape(B*T, H) @ fc ordering (tiny array; one XLA op).
    logits = jnp.transpose(out_tm.reshape(T, B, O), (1, 0, 2)).reshape(B * T, O)
    return logits, (h_n[None], c_n[None])


def char_lstm_ref(params, input_ids, hidden):
    """Pure-JAX reference of the same forward pass (for correctness check)."""
    h = hidden[0][0]
    c = hidden[1][0]
    emb = params["embed"][input_ids]          # (B, T, H)
    H = h.shape[-1]
    outs = []
    for t in range(emb.shape[1]):
        x_t = emb[:, t, :]
        gates = (x_t @ params["w_ih"].T + h @ params["w_hh"].T
                 + params["b_ih"] + params["b_hh"])
        i_g = jax.nn.sigmoid(gates[:, 0 * H:1 * H])
        f_g = jax.nn.sigmoid(gates[:, 1 * H:2 * H])
        g_g = jnp.tanh(gates[:, 2 * H:3 * H])
        o_g = jax.nn.sigmoid(gates[:, 3 * H:4 * H])
        c = f_g * c + i_g * g_g
        h = o_g * jnp.tanh(c)
        outs.append(h)
    out = jnp.stack(outs, axis=1)             # (B, T, H)
    B, T, _ = out.shape
    logits = out.reshape(B * T, H) @ params["w_fc"].T + params["b_fc"]
    return logits, (h[None], c[None])


def init_params(key, vocab_size, hidden_size, output_size):
    ks = jax.random.split(key, 7)
    H, V, O = hidden_size, vocab_size, output_size
    s = 0.1
    return {
        "embed": jax.random.normal(ks[0], (V, H), jnp.float32) * s,
        "w_ih": jax.random.normal(ks[1], (4 * H, H), jnp.float32) * s,
        "w_hh": jax.random.normal(ks[2], (4 * H, H), jnp.float32) * s,
        "b_ih": jax.random.normal(ks[3], (4 * H,), jnp.float32) * s,
        "b_hh": jax.random.normal(ks[4], (4 * H,), jnp.float32) * s,
        "w_fc": jax.random.normal(ks[5], (O, H), jnp.float32) * s,
        "b_fc": jax.random.normal(ks[6], (O,), jnp.float32) * s,
    }


if __name__ == "__main__":
    vocab_size, hidden_size, output_size = 16, 32, 10
    batch, seq = 2, 8

    key = jax.random.PRNGKey(0)
    kp, kx = jax.random.split(key)
    params = init_params(kp, vocab_size, hidden_size, output_size)

    input_ids = jax.random.randint(kx, (batch, seq), 0, vocab_size, jnp.int32)
    hidden = (jnp.zeros((1, batch, hidden_size), jnp.float32),
              jnp.zeros((1, batch, hidden_size), jnp.float32))

    fwd = jax.jit(functools.partial(char_lstm_pallas, params))
    logits, (h_n, c_n) = fwd(input_ids, hidden)
    jax.block_until_ready((logits, h_n, c_n))

    # correctness check vs pure-JAX reference
    ref_logits, (ref_h, ref_c) = char_lstm_ref(params, input_ids, hidden)
    assert logits.shape == (batch * seq, output_size)
    assert jnp.allclose(logits, ref_logits, atol=1e-4)
    assert jnp.allclose(h_n, ref_h, atol=1e-4)
    assert jnp.allclose(c_n, ref_c, atol=1e-4)

    print("KERNEL_OK")
</pallas_src>

<mosaic_0001>
module attributes {stable_mosaic.version = 11 : i64} {
  func.func @char_lstm_kernel(%arg0: memref<16x32xf32, #tpu.memory_space<vmem>>, %arg1: memref<2x32xf32, #tpu.memory_space<vmem>>, %arg2: memref<2x32xf32, #tpu.memory_space<vmem>>, %arg3: memref<32x128xf32, #tpu.memory_space<vmem>>, %arg4: memref<32x128xf32, #tpu.memory_space<vmem>>, %arg5: memref<1x128xf32, #tpu.memory_space<vmem>>, %arg6: memref<32x10xf32, #tpu.memory_space<vmem>>, %arg7: memref<1x10xf32, #tpu.memory_space<vmem>>, %arg8: memref<16x10xf32, #tpu.memory_space<vmem>>, %arg9: memref<2x32xf32, #tpu.memory_space<vmem>>, %arg10: memref<2x32xf32, #tpu.memory_space<vmem>>, %arg11: memref<16x32xf32, #tpu.memory_space<vmem>>) attributes {dimension_semantics = [], scalar_prefetch = 0 : i64, scratch_operands = 1 : i64, tpu.core_type = #tpu.core_type<tc>} {
    %c0 = arith.constant 0 : index
    %c0_0 = arith.constant 0 : index
    %0 = vector.load %arg0[%c0, %c0_0] : memref<16x32xf32, #tpu.memory_space<vmem>>, vector<16x32xf32>
    %c0_1 = arith.constant 0 : index
    %c0_2 = arith.constant 0 : index
    %1 = vector.load %arg3[%c0_1, %c0_2] : memref<32x128xf32, #tpu.memory_space<vmem>>, vector<32x128xf32>
    %cst = arith.constant dense<0.000000e+00> : vector<16x128xf32>
    %2 = tpu.matmul %0, %1, %cst {dimension_numbers = #tpu.dot_dimension_numbers<[1], [0], [0], [1], [0, 0, 1, 1], [], []>} : vector<16x32xf32>, vector<32x128xf32>, vector<16x128xf32> -> vector<16x128xf32>
    %c0_3 = arith.constant 0 : index
    %c0_4 = arith.constant 0 : index
    %3 = vector.load %arg5[%c0_3, %c0_4] : memref<1x128xf32, #tpu.memory_space<vmem>>, vector<1x128xf32>
    %4 = vector.broadcast %3 : vector<1x128xf32> to vector<16x128xf32>
    %5 = arith.addf %2, %4 : vector<16x128xf32>
    %c0_5 = arith.constant 0 : index
    %c0_6 = arith.constant 0 : index
    %6 = vector.load %arg4[%c0_5, %c0_6] : memref<32x128xf32, #tpu.memory_space<vmem>>, vector<32x128xf32>
    %c0_7 = arith.constant 0 : index
    %c0_8 = arith.constant 0 : index
    %7 = vector.load %arg1[%c0_7, %c0_8] : memref<2x32xf32, #tpu.memory_space<vmem>>, vector<2x32xf32>
    %c0_9 = arith.constant 0 : index
    %c0_10 = arith.constant 0 : index
    %8 = vector.load %arg2[%c0_9, %c0_10] : memref<2x32xf32, #tpu.memory_space<vmem>>, vector<2x32xf32>
    %9 = vector.extract_strided_slice %5 {offsets = [0, 0], sizes = [2, 128], strides = [1, 1]} : vector<16x128xf32> to vector<2x128xf32>
    %cst_11 = arith.constant dense<0.000000e+00> : vector<2x128xf32>
    %10 = tpu.matmul %7, %6, %cst_11 {dimension_numbers = #tpu.dot_dimension_numbers<[1], [0], [0], [1], [0, 0, 1, 1], [], []>} : vector<2x32xf32>, vector<32x128xf32>, vector<2x128xf32> -> vector<2x128xf32>
    %11 = arith.addf %9, %10 : vector<2x128xf32>
    %12 = vector.extract_strided_slice %11 {offsets = [0, 0], sizes = [2, 32], strides = [1, 1]} : vector<2x128xf32> to vector<2x32xf32>
    %13 = arith.negf %12 : vector<2x32xf32>
    %14 = math.exp %13 : vector<2x32xf32>
    %cst_12 = arith.constant 1.000000e+00 : f32
    %15 = vector.broadcast %cst_12 : f32 to vector<2x32xf32>
    %16 = arith.addf %15, %14 : vector<2x32xf32>
    %17 = arith.divf %15, %16 : vector<2x32xf32>
    %18 = vector.extract_strided_slice %11 {offsets = [0, 32], sizes = [2, 32], strides = [1, 1]} : vector<2x128xf32> to vector<2x32xf32>
    %19 = arith.negf %18 : vector<2x32xf32>
    %20 = math.exp %19 : vector<2x32xf32>
    %cst_13 = arith.constant 1.000000e+00 : f32
    %21 = vector.broadcast %cst_13 : f32 to vector<2x32xf32>
    %22 = arith.addf %21, %20 : vector<2x32xf32>
    %23 = arith.divf %21, %22 : vector<2x32xf32>
    %24 = vector.extract_strided_slice %11 {offsets = [0, 64], sizes = [2, 32], strides = [1, 1]} : vector<2x128xf32> to vector<2x32xf32>
    %25 = math.tanh %24 : vector<2x32xf32>
    %26 = vector.extract_strided_slice %11 {offsets = [0, 96], sizes = [2, 32], strides = [1, 1]} : vector<2x128xf32> to vector<2x32xf32>
    %27 = arith.negf %26 : vector<2x32xf32>
    %28 = math.exp %27 : vector<2x32xf32>
    %cst_14 = arith.constant 1.000000e+00 : f32
    %29 = vector.broadcast %cst_14 : f32 to vector<2x32xf32>
    %30 = arith.addf %29, %28 : vector<2x32xf32>
    %31 = arith.divf %29, %30 : vector<2x32xf32>
    %32 = arith.mulf %23, %8 : vector<2x32xf32>
    %33 = arith.mulf %17, %25 : vector<2x32xf32>
    %34 = arith.addf %32, %33 : vector<2x32xf32>
    %35 = math.tanh %34 : vector<2x32xf32>
    %36 = arith.mulf %31, %35 : vector<2x32xf32>
    %c0_15 = arith.constant 0 : index
    %c0_16 = arith.constant 0 : index
    %37 = vector.load %arg11[%c0_15, %c0_16] : memref<16x32xf32, #tpu.memory_space<vmem>>, vector<2x32xf32>
    tpu.vector_store %arg11[%c0_15, %c0_16], %36 {strides = array<i32>} : memref<16x32xf32, #tpu.memory_space<vmem>>, vector<2x32xf32>,
    %38 = vector.extract_strided_slice %5 {offsets = [2, 0], sizes = [2, 128], strides = [1, 1]} : vector<16x128xf32> to vector<2x128xf32>
    %cst_17 = arith.constant dense<0.000000e+00> : vector<2x128xf32>
    %39 = tpu.matmul %36, %6, %cst_17 {dimension_numbers = #tpu.dot_dimension_numbers<[1], [0], [0], [1], [0, 0, 1, 1], [], []>} : vector<2x32xf32>, vector<32x128xf32>, vector<2x128xf32> -> vector<2x128xf32>
    %40 = arith.addf %38, %39 : vector<2x128xf32>
    %41 = vector.extract_strided_slice %40 {offsets = [0, 0], sizes = [2, 32], strides = [1, 1]} : vector<2x128xf32> to vector<2x32xf32>
    %42 = arith.negf %41 : vector<2x32xf32>
    %43 = math.exp %42 : vector<2x32xf32>
    %cst_18 = arith.constant 1.000000e+00 : f32
    %44 = vector.broadcast %cst_18 : f32 to vector<2x32xf32>
    %45 = arith.addf %44, %43 : vector<2x32xf32>
    %46 = arith.divf %44, %45 : vector<2x32xf32>
    %47 = vector.extract_strided_slice %40 {offsets = [0, 32], sizes = [2, 32], strides = [1, 1]} : vector<2x128xf32> to vector<2x32xf32>
    %48 = arith.negf %47 : vector<2x32xf32>
    %49 = math.exp %48 : vector<2x32xf32>
    %cst_19 = arith.constant 1.000000e+00 : f32
    %50 = vector.broadcast %cst_19 : f32 to vector<2x32xf32>
    %51 = arith.addf %50, %49 : vector<2x32xf32>
    %52 = arith.divf %50, %51 : vector<2x32xf32>
    %53 = vector.extract_strided_slice %40 {offsets = [0, 64], sizes = [2, 32], strides = [1, 1]} : vector<2x128xf32> to vector<2x32xf32>
    %54 = math.tanh %53 : vector<2x32xf32>
    %55 = vector.extract_strided_slice %40 {offsets = [0, 96], sizes = [2, 32], strides = [1, 1]} : vector<2x128xf32> to vector<2x32xf32>
    %56 = arith.negf %55 : vector<2x32xf32>
    %57 = math.exp %56 : vector<2x32xf32>
    %cst_20 = arith.constant 1.000000e+00 : f32
    %58 = vector.broadcast %cst_20 : f32 to vector<2x32xf32>
    %59 = arith.addf %58, %57 : vector<2x32xf32>
    %60 = arith.divf %58, %59 : vector<2x32xf32>
    %61 = arith.mulf %52, %34 : vector<2x32xf32>
    %62 = arith.mulf %46, %54 : vector<2x32xf32>
    %63 = arith.addf %61, %62 : vector<2x32xf32>
    %64 = math.tanh %63 : vector<2x32xf32>
    %65 = arith.mulf %60, %64 : vector<2x32xf32>
    %c2 = arith.constant 2 : index
    %c0_21 = arith.constant 0 : index
    %66 = vector.load %arg11[%c2, %c0_21] : memref<16x32xf32, #tpu.memory_space<vmem>>, vector<2x32xf32>
    tpu.vector_store %arg11[%c2, %c0_21], %65 {strides = array<i32>} : memref<16x32xf32, #tpu.memory_space<vmem>>, vector<2x32xf32>,
    %67 = vector.extract_strided_slice %5 {offsets = [4, 0], sizes = [2, 128], strides = [1, 1]} : vector<16x128xf32> to vector<2x128xf32>
    %cst_22 = arith.constant dense<0.000000e+00> : vector<2x128xf32>
    %68 = tpu.matmul %65, %6, %cst_22 {dimension_numbers = #tpu.dot_dimension_numbers<[1], [0], [0], [1], [0, 0, 1, 1], [], []>} : vector<2x32xf32>, vector<32x128xf32>, vector<2x128xf32> -> vector<2x128xf32>
    %69 = arith.addf %67, %68 : vector<2x128xf32>
    %70 = vector.extract_strided_slice %69 {offsets = [0, 0], sizes = [2, 32], strides = [1, 1]} : vector<2x128xf32> to vector<2x32xf32>
    %71 = arith.negf %70 : vector<2x32xf32>
    %72 = math.exp %71 : vector<2x32xf32>
    %cst_23 = arith.constant 1.000000e+00 : f32
    %73 = vector.broadcast %cst_23 : f32 to vector<2x32xf32>
    %74 = arith.addf %73, %72 : vector<2x32xf32>
    %75 = arith.divf %73, %74 : vector<2x32xf32>
    %76 = vector.extract_strided_slice %69 {offsets = [0, 32], sizes = [2, 32], strides = [1, 1]} : vector<2x128xf32> to vector<2x32xf32>
    %77 = arith.negf %76 : vector<2x32xf32>
    %78 = math.exp %77 : vector<2x32xf32>
    %cst_24 = arith.constant 1.000000e+00 : f32
    %79 = vector.broadcast %cst_24 : f32 to vector<2x32xf32>
    %80 = arith.addf %79, %78 : vector<2x32xf32>
    %81 = arith.divf %79, %80 : vector<2x32xf32>
    %82 = vector.extract_strided_slice %69 {offsets = [0, 64], sizes = [2, 32], strides = [1, 1]} : vector<2x128xf32> to vector<2x32xf32>
    %83 = math.tanh %82 : vector<2x32xf32>
    %84 = vector.extract_strided_slice %69 {offsets = [0, 96], sizes = [2, 32], strides = [1, 1]} : vector<2x128xf32> to vector<2x32xf32>
    %85 = arith.negf %84 : vector<2x32xf32>
    %86 = math.exp %85 : vector<2x32xf32>
    %cst_25 = arith.constant 1.000000e+00 : f32
    %87 = vector.broadcast %cst_25 : f32 to vector<2x32xf32>
    %88 = arith.addf %87, %86 : vector<2x32xf32>
    %89 = arith.divf %87, %88 : vector<2x32xf32>
    %90 = arith.mulf %81, %63 : vector<2x32xf32>
    %91 = arith.mulf %75, %83 : vector<2x32xf32>
    %92 = arith.addf %90, %91 : vector<2x32xf32>
    %93 = math.tanh %92 : vector<2x32xf32>
    %94 = arith.mulf %89, %93 : vector<2x32xf32>
    %c4 = arith.constant 4 : index
    %c0_26 = arith.constant 0 : index
    %95 = vector.load %arg11[%c4, %c0_26] : memref<16x32xf32, #tpu.memory_space<vmem>>, vector<2x32xf32>
    tpu.vector_store %arg11[%c4, %c0_26], %94 {strides = array<i32>} : memref<16x32xf32, #tpu.memory_space<vmem>>, vector<2x32xf32>,
    %96 = vector.extract_strided_slice %5 {offsets = [6, 0], sizes = [2, 128], strides = [1, 1]} : vector<16x128xf32> to vector<2x128xf32>
    %cst_27 = arith.constant dense<0.000000e+00> : vector<2x128xf32>
    %97 = tpu.matmul %94, %6, %cst_27 {dimension_numbers = #tpu.dot_dimension_numbers<[1], [0], [0], [1], [0, 0, 1, 1], [], []>} : vector<2x32xf32>, vector<32x128xf32>, vector<2x128xf32> -> vector<2x128xf32>
    %98 = arith.addf %96, %97 : vector<2x128xf32>
    %99 = vector.extract_strided_slice %98 {offsets = [0, 0], sizes = [2, 32], strides = [1, 1]} : vector<2x128xf32> to vector<2x32xf32>
    %100 = arith.negf %99 : vector<2x32xf32>
    %101 = math.exp %100 : vector<2x32xf32>
    %cst_28 = arith.constant 1.000000e+00 : f32
    %102 = vector.broadcast %cst_28 : f32 to vector<2x32xf32>
    %103 = arith.addf %102, %101 : vector<2x32xf32>
    %104 = arith.divf %102, %103 : vector<2x32xf32>
    %105 = vector.extract_strided_slice %98 {offsets = [0, 32], sizes = [2, 32], strides = [1, 1]} : vector<2x128xf32> to vector<2x32xf32>
    %106 = arith.negf %105 : vector<2x32xf32>
    %107 = math.exp %106 : vector<2x32xf32>
    %cst_29 = arith.constant 1.000000e+00 : f32
    %108 = vector.broadcast %cst_29 : f32 to vector<2x32xf32>
    %109 = arith.addf %108, %107 : vector<2x32xf32>
    %110 = arith.divf %108, %109 : vector<2x32xf32>
    %111 = vector.extract_strided_slice %98 {offsets = [0, 64], sizes = [2, 32], strides = [1, 1]} : vector<2x128xf32> to vector<2x32xf32>
    %112 = math.tanh %111 : vector<2x32xf32>
    %113 = vector.extract_strided_slice %98 {offsets = [0, 96], sizes = [2, 32], strides = [1, 1]} : vector<2x128xf32> to vector<2x32xf32>
    %114 = arith.negf %113 : vector<2x32xf32>
    %115 = math.exp %114 : vector<2x32xf32>
    %cst_30 = arith.constant 1.000000e+00 : f32
    %116 = vector.broadcast %cst_30 : f32 to vector<2x32xf32>
    %117 = arith.addf %116, %115 : vector<2x32xf32>
    %118 = arith.divf %116, %117 : vector<2x32xf32>
    %119 = arith.mulf %110, %92 : vector<2x32xf32>
    %120 = arith.mulf %104, %112 : vector<2x32xf32>
    %121 = arith.addf %119, %120 : vector<2x32xf32>
    %122 = math.tanh %121 : vector<2x32xf32>
    %123 = arith.mulf %118, %122 : vector<2x32xf32>
    %c6 = arith.constant 6 : index
    %c0_31 = arith.constant 0 : index
    %124 = vector.load %arg11[%c6, %c0_31] : memref<16x32xf32, #tpu.memory_space<vmem>>, vector<2x32xf32>
    tpu.vector_store %arg11[%c6, %c0_31], %123 {strides = array<i32>} : memref<16x32xf32, #tpu.memory_space<vmem>>, vector<2x32xf32>,
    %125 = vector.extract_strided_slice %5 {offsets = [8, 0], sizes = [2, 128], strides = [1, 1]} : vector<16x128xf32> to vector<2x128xf32>
    %cst_32 = arith.constant dense<0.000000e+00> : vector<2x128xf32>
    %126 = tpu.matmul %123, %6, %cst_32 {dimension_numbers = #tpu.dot_dimension_numbers<[1], [0], [0], [1], [0, 0, 1, 1], [], []>} : vector<2x32xf32>, vector<32x128xf32>, vector<2x128xf32> -> vector<2x128xf32>
    %127 = arith.addf %125, %126 : vector<2x128xf32>
    %128 = vector.extract_strided_slice %127 {offsets = [0, 0], sizes = [2, 32], strides = [1, 1]} : vector<2x128xf32> to vector<2x32xf32>
    %129 = arith.negf %128 : vector<2x32xf32>
    %130 = math.exp %129 : vector<2x32xf32>
    %cst_33 = arith.constant 1.000000e+00 : f32
    %131 = vector.broadcast %cst_33 : f32 to vector<2x32xf32>
    %132 = arith.addf %131, %130 : vector<2x32xf32>
    %133 = arith.divf %131, %132 : vector<2x32xf32>
    %134 = vector.extract_strided_slice %127 {offsets = [0, 32], sizes = [2, 32], strides = [1, 1]} : vector<2x128xf32> to vector<2x32xf32>
    %135 = arith.negf %134 : vector<2x32xf32>
    %136 = math.exp %135 : vector<2x32xf32>
    %cst_34 = arith.constant 1.000000e+00 : f32
    %137 = vector.broadcast %cst_34 : f32 to vector<2x32xf32>
    %138 = arith.addf %137, %136 : vector<2x32xf32>
    %139 = arith.divf %137, %138 : vector<2x32xf32>
    %140 = vector.extract_strided_slice %127 {offsets = [0, 64], sizes = [2, 32], strides = [1, 1]} : vector<2x128xf32> to vector<2x32xf32>
    %141 = math.tanh %140 : vector<2x32xf32>
    %142 = vector.extract_strided_slice %127 {offsets = [0, 96], sizes = [2, 32], strides = [1, 1]} : vector<2x128xf32> to vector<2x32xf32>
    %143 = arith.negf %142 : vector<2x32xf32>
    %144 = math.exp %143 : vector<2x32xf32>
    %cst_35 = arith.constant 1.000000e+00 : f32
    %145 = vector.broadcast %cst_35 : f32 to vector<2x32xf32>
    %146 = arith.addf %145, %144 : vector<2x32xf32>
    %147 = arith.divf %145, %146 : vector<2x32xf32>
    %148 = arith.mulf %139, %121 : vector<2x32xf32>
    %149 = arith.mulf %133, %141 : vector<2x32xf32>
    %150 = arith.addf %148, %149 : vector<2x32xf32>
    %151 = math.tanh %150 : vector<2x32xf32>
    %152 = arith.mulf %147, %151 : vector<2x32xf32>
    %c8 = arith.constant 8 : index
    %c0_36 = arith.constant 0 : index
    %153 = vector.load %arg11[%c8, %c0_36] : memref<16x32xf32, #tpu.memory_space<vmem>>, vector<2x32xf32>
    tpu.vector_store %arg11[%c8, %c0_36], %152 {strides = array<i32>} : memref<16x32xf32, #tpu.memory_space<vmem>>, vector<2x32xf32>,
    %154 = vector.extract_strided_slice %5 {offsets = [10, 0], sizes = [2, 128], strides = [1, 1]} : vector<16x128xf32> to vector<2x128xf32>
    %cst_37 = arith.constant dense<0.000000e+00> : vector<2x128xf32>
    %155 = tpu.matmul %152, %6, %cst_37 {dimension_numbers = #tpu.dot_dimension_numbers<[1], [0], [0], [1], [0, 0, 1, 1], [], []>} : vector<2x32xf32>, vector<32x128xf32>, vector<2x128xf32> -> vector<2x128xf32>
    %156 = arith.addf %154, %155 : vector<2x128xf32>
    %157 = vector.extract_strided_slice %156 {offsets = [0, 0], sizes = [2, 32], strides = [1, 1]} : vector<2x128xf32> to vector<2x32xf32>
    %158 = arith.negf %157 : vector<2x32xf32>
    %159 = math.exp %158 : vector<2x32xf32>
    %cst_38 = arith.constant 1.000000e+00 : f32
    %160 = vector.broadcast %cst_38 : f32 to vector<2x32xf32>
    %161 = arith.addf %160, %159 : vector<2x32xf32>
    %162 = arith.divf %160, %161 : vector<2x32xf32>
    %163 = vector.extract_strided_slice %156 {offsets = [0, 32], sizes = [2, 32], strides = [1, 1]} : vector<2x128xf32> to vector<2x32xf32>
    %164 = arith.negf %163 : vector<2x32xf32>
    %165 = math.exp %164 : vector<2x32xf32>
    %cst_39 = arith.constant 1.000000e+00 : f32
    %166 = vector.broadcast %cst_39 : f32 to vector<2x32xf32>
    %167 = arith.addf %166, %165 : vector<2x32xf32>
    %168 = arith.divf %166, %167 : vector<2x32xf32>
    %169 = vector.extract_strided_slice %156 {offsets = [0, 64], sizes = [2, 32], strides = [1, 1]} : vector<2x128xf32> to vector<2x32xf32>
    %170 = math.tanh %169 : vector<2x32xf32>
    %171 = vector.extract_strided_slice %156 {offsets = [0, 96], sizes = [2, 32], strides = [1, 1]} : vector<2x128xf32> to vector<2x32xf32>
    %172 = arith.negf %171 : vector<2x32xf32>
    %173 = math.exp %172 : vector<2x32xf32>
    %cst_40 = arith.constant 1.000000e+00 : f32
    %174 = vector.broadcast %cst_40 : f32 to vector<2x32xf32>
    %175 = arith.addf %174, %173 : vector<2x32xf32>
    %176 = arith.divf %174, %175 : vector<2x32xf32>
    %177 = arith.mulf %168, %150 : vector<2x32xf32>
    %178 = arith.mulf %162, %170 : vector<2x32xf32>
    %179 = arith.addf %177, %178 : vector<2x32xf32>
    %180 = math.tanh %179 : vector<2x32xf32>
    %181 = arith.mulf %176, %180 : vector<2x32xf32>
    %c10 = arith.constant 10 : index
    %c0_41 = arith.constant 0 : index
    %182 = vector.load %arg11[%c10, %c0_41] : memref<16x32xf32, #tpu.memory_space<vmem>>, vector<2x32xf32>
    tpu.vector_store %arg11[%c10, %c0_41], %181 {strides = array<i32>} : memref<16x32xf32, #tpu.memory_space<vmem>>, vector<2x32xf32>,
    %183 = vector.extract_strided_slice %5 {offsets = [12, 0], sizes = [2, 128], strides = [1, 1]} : vector<16x128xf32> to vector<2x128xf32>
    %cst_42 = arith.constant dense<0.000000e+00> : vector<2x128xf32>
    %184 = tpu.matmul %181, %6, %cst_42 {dimension_numbers = #tpu.dot_dimension_numbers<[1], [0], [0], [1], [0, 0, 1, 1], [], []>} : vector<2x32xf32>, vector<32x128xf32>, vector<2x128xf32> -> vector<2x128xf32>
    %185 = arith.addf %183, %184 : vector<2x128xf32>
    %186 = vector.extract_strided_slice %185 {offsets = [0, 0], sizes = [2, 32], strides = [1, 1]} : vector<2x128xf32> to vector<2x32xf32>
    %187 = arith.negf %186 : vector<2x32xf32>
    %188 = math.exp %187 : vector<2x32xf32>
    %cst_43 = arith.constant 1.000000e+00 : f32
    %189 = vector.broadcast %cst_43 : f32 to vector<2x32xf32>
    %190 = arith.addf %189, %188 : vector<2x32xf32>
    %191 = arith.divf %189, %190 : vector<2x32xf32>
    %192 = vector.extract_strided_slice %185 {offsets = [0, 32], sizes = [2, 32], strides = [1, 1]} : vector<2x128xf32> to vector<2x32xf32>
    %193 = arith.negf %192 : vector<2x32xf32>
    %194 = math.exp %193 : vector<2x32xf32>
    %cst_44 = arith.constant 1.000000e+00 : f32
    %195 = vector.broadcast %cst_44 : f32 to vector<2x32xf32>
    %196 = arith.addf %195, %194 : vector<2x32xf32>
    %197 = arith.divf %195, %196 : vector<2x32xf32>
    %198 = vector.extract_strided_slice %185 {offsets = [0, 64], sizes = [2, 32], strides = [1, 1]} : vector<2x128xf32> to vector<2x32xf32>
    %199 = math.tanh %198 : vector<2x32xf32>
    %200 = vector.extract_strided_slice %185 {offsets = [0, 96], sizes = [2, 32], strides = [1, 1]} : vector<2x128xf32> to vector<2x32xf32>
    %201 = arith.negf %200 : vector<2x32xf32>
    %202 = math.exp %201 : vector<2x32xf32>
    %cst_45 = arith.constant 1.000000e+00 : f32
    %203 = vector.broadcast %cst_45 : f32 to vector<2x32xf32>
    %204 = arith.addf %203, %202 : vector<2x32xf32>
    %205 = arith.divf %203, %204 : vector<2x32xf32>
    %206 = arith.mulf %197, %179 : vector<2x32xf32>
    %207 = arith.mulf %191, %199 : vector<2x32xf32>
    %208 = arith.addf %206, %207 : vector<2x32xf32>
    %209 = math.tanh %208 : vector<2x32xf32>
    %210 = arith.mulf %205, %209 : vector<2x32xf32>
    %c12 = arith.constant 12 : index
    %c0_46 = arith.constant 0 : index
    %211 = vector.load %arg11[%c12, %c0_46] : memref<16x32xf32, #tpu.memory_space<vmem>>, vector<2x32xf32>
    tpu.vector_store %arg11[%c12, %c0_46], %210 {strides = array<i32>} : memref<16x32xf32, #tpu.memory_space<vmem>>, vector<2x32xf32>,
    %212 = vector.extract_strided_slice %5 {offsets = [14, 0], sizes = [2, 128], strides = [1, 1]} : vector<16x128xf32> to vector<2x128xf32>
    %cst_47 = arith.constant dense<0.000000e+00> : vector<2x128xf32>
    %213 = tpu.matmul %210, %6, %cst_47 {dimension_numbers = #tpu.dot_dimension_numbers<[1], [0], [0], [1], [0, 0, 1, 1], [], []>} : vector<2x32xf32>, vector<32x128xf32>, vector<2x128xf32> -> vector<2x128xf32>
    %214 = arith.addf %212, %213 : vector<2x128xf32>
    %215 = vector.extract_strided_slice %214 {offsets = [0, 0], sizes = [2, 32], strides = [1, 1]} : vector<2x128xf32> to vector<2x32xf32>
    %216 = arith.negf %215 : vector<2x32xf32>
    %217 = math.exp %216 : vector<2x32xf32>
    %cst_48 = arith.constant 1.000000e+00 : f32
    %218 = vector.broadcast %cst_48 : f32 to vector<2x32xf32>
    %219 = arith.addf %218, %217 : vector<2x32xf32>
    %220 = arith.divf %218, %219 : vector<2x32xf32>
    %221 = vector.extract_strided_slice %214 {offsets = [0, 32], sizes = [2, 32], strides = [1, 1]} : vector<2x128xf32> to vector<2x32xf32>
    %222 = arith.negf %221 : vector<2x32xf32>
    %223 = math.exp %222 : vector<2x32xf32>
    %cst_49 = arith.constant 1.000000e+00 : f32
    %224 = vector.broadcast %cst_49 : f32 to vector<2x32xf32>
    %225 = arith.addf %224, %223 : vector<2x32xf32>
    %226 = arith.divf %224, %225 : vector<2x32xf32>
    %227 = vector.extract_strided_slice %214 {offsets = [0, 64], sizes = [2, 32], strides = [1, 1]} : vector<2x128xf32> to vector<2x32xf32>
    %228 = math.tanh %227 : vector<2x32xf32>
    %229 = vector.extract_strided_slice %214 {offsets = [0, 96], sizes = [2, 32], strides = [1, 1]} : vector<2x128xf32> to vector<2x32xf32>
    %230 = arith.negf %229 : vector<2x32xf32>
    %231 = math.exp %230 : vector<2x32xf32>
    %cst_50 = arith.constant 1.000000e+00 : f32
    %232 = vector.broadcast %cst_50 : f32 to vector<2x32xf32>
    %233 = arith.addf %232, %231 : vector<2x32xf32>
    %234 = arith.divf %232, %233 : vector<2x32xf32>
    %235 = arith.mulf %226, %208 : vector<2x32xf32>
    %236 = arith.mulf %220, %228 : vector<2x32xf32>
    %237 = arith.addf %235, %236 : vector<2x32xf32>
    %238 = math.tanh %237 : vector<2x32xf32>
    %239 = arith.mulf %234, %238 : vector<2x32xf32>
    %c14 = arith.constant 14 : index
    %c0_51 = arith.constant 0 : index
    %240 = vector.load %arg11[%c14, %c0_51] : memref<16x32xf32, #tpu.memory_space<vmem>>, vector<2x32xf32>
    tpu.vector_store %arg11[%c14, %c0_51], %239 {strides = array<i32>} : memref<16x32xf32, #tpu.memory_space<vmem>>, vector<2x32xf32>,
    %c0_52 = arith.constant 0 : index
    %c0_53 = arith.constant 0 : index
    %241 = vector.load %arg9[%c0_52, %c0_53] : memref<2x32xf32, #tpu.memory_space<vmem>>, vector<2x32xf32>
    tpu.vector_store %arg9[%c0_52, %c0_53], %239 {strides = array<i32>} : memref<2x32xf32, #tpu.memory_space<vmem>>, vector<2x32xf32>,
    %c0_54 = arith.constant 0 : index
    %c0_55 = arith.constant 0 : index
    %242 = vector.load %arg10[%c0_54, %c0_55] : memref<2x32xf32, #tpu.memory_space<vmem>>, vector<2x32xf32>
    tpu.vector_store %arg10[%c0_54, %c0_55], %237 {strides = array<i32>} : memref<2x32xf32, #tpu.memory_space<vmem>>, vector<2x32xf32>,
    %c0_56 = arith.constant 0 : index
    %c0_57 = arith.constant 0 : index
    %243 = vector.load %arg11[%c0_56, %c0_57] : memref<16x32xf32, #tpu.memory_space<vmem>>, vector<16x32xf32>
    %c0_58 = arith.constant 0 : index
    %c0_59 = arith.constant 0 : index
    %244 = vector.load %arg6[%c0_58, %c0_59] : memref<32x10xf32, #tpu.memory_space<vmem>>, vector<32x10xf32>
    %cst_60 = arith.constant dense<0.000000e+00> : vector<16x10xf32>
    %245 = tpu.matmul %243, %244, %cst_60 {dimension_numbers = #tpu.dot_dimension_numbers<[1], [0], [0], [1], [0, 0, 1, 1], [], []>} : vector<16x32xf32>, vector<32x10xf32>, vector<16x10xf32> -> vector<16x10xf32>
    %c0_61 = arith.constant 0 : index
    %c0_62 = arith.constant 0 : index
    %246 = vector.load %arg7[%c0_61, %c0_62] : memref<1x10xf32, #tpu.memory_space<vmem>>, vector<1x10xf32>
    %247 = vector.broadcast %246 : vector<1x10xf32> to vector<16x10xf32>
    %248 = arith.addf %245, %247 : vector<16x10xf32>
    %c0_63 = arith.constant 0 : index
    %c0_64 = arith.constant 0 : index
    %249 = vector.load %arg8[%c0_63, %c0_64] : memref<16x10xf32, #tpu.memory_space<vmem>>, vector<16x10xf32>
    tpu.vector_store %arg8[%c0_63, %c0_64], %248 {strides = array<i32>} : memref<16x10xf32, #tpu.memory_space<vmem>>, vector<16x10xf32>,
    return
  }
}

</mosaic_0001>

<bundles_post_ra>
// kernel: char_lstm_pallas.1
= control target key start
LH: loop header
LB: loop body
LE: loop exit
PB: predicated region body
PF: predicated region fallthrough
CT: control target
= control target key end

     0   :  { %16 = vsyncpa [#allocation4], 0  ;;  %s1140_s0 = inlined_call_operand.vmem [shape: f32[16,32], index: 0, kind: input, shape index: {}]   ;;  %s1141_s1 = inlined_call_operand.vmem [shape: f32[2,32], index: 1, kind: input, shape index: {}]   ;;  %s1142_s2 = inlined_call_operand.vmem [shape: f32[2,32], index: 2, kind: input, shape index: {}]   ;;  %s1143_s3 = inlined_call_operand.vmem [shape: f32[32,128], index: 3, kind: input, shape index: {}]   ;;  %s1144_s4 = inlined_call_operand.vmem [shape: f32[32,128], index: 4, kind: input, shape index: {}]   ;;  %s1145_s5 = inlined_call_operand.vmem [shape: f32[1,128], index: 5, kind: input, shape index: {}]   ;;  %s1146_s6 = inlined_call_operand.vmem [shape: f32[32,10], index: 6, kind: input, shape index: {}]   ;;  %s1147_s7 = inlined_call_operand.vmem [shape: f32[1,10], index: 7, kind: input, shape index: {}]   ;;  %s1148_s8 = inlined_call_operand.vmem [shape: f32[16,10], index: 8, kind: output, shape index: {0}]   ;;  %s1149_s9 = inlined_call_operand.hbm [shape: f32[2,32], index: 9, kind: output, shape index: {1}]   ;;  %s1150_s10 = inlined_call_operand.hbm [shape: f32[2,32], index: 10, kind: output, shape index: {2}]  }
   0x1   :  { %v39_v0 = vld [vmem:[%s1143_s3 + $0x18] sm:$0xff]  ;;  %v38_v1 = vld [vmem:[%s1143_s3 + $0x10] sm:$0xff]  ;;  %v37_v4 = vld [vmem:[%s1143_s3 + $0x8] sm:$0xff] }
   0x2   :  { %v959_v2 = vld [vmem:[%s1144_s4 + $0x18] sm:$0xff]  ;;  %63 = vmatpush.msra.mxu0 %v39_v0  ;;  %v965_v3 = vld [vmem:[%s1144_s4 + $0x10] sm:$0xff]  ;;  %v973_v5 = vld [vmem:[%s1144_s4 + $0x8] sm:$0xff] }
   0x3   :  { %95 = vmatpush.msra.mxu1 %v959_v2  ;;  %165 = vmatpush.msra.mxu3 %v959_v2  ;;  %v36_v6 = vld [vmem:[%s1143_s3] sm:$0xff] }
   0x4   :  { %390 = vmatpush.msra.mxu2 %v959_v2  ;;  %64 = vmatpush.msra.mxu0 %v38_v1  ;;  %v984_v7 = vld [vmem:[%s1144_s4] sm:$0xff] }
   0x5   :  { %96 = vmatpush.msra.mxu1 %v965_v3  ;;  %166 = vmatpush.msra.mxu3 %v965_v3 }
   0x6   :  { %391 = vmatpush.msra.mxu2 %v965_v3 }
   0x7   :  { %17 = vsyncpa [#allocation6], 0  ;;  %65 = vmatpush.msra.mxu0 %v37_v4  ;;  %97 = vmatpush.msra.mxu1 %v973_v5  ;;  %v34_v8 = vld [vmem:[%s1140_s0] sm:$0xff]  ;;  %vm44_vm0 = vcmask 261120   ;;  %s890_s12 = smov 64   ;;  %s891_s15 = smov 32  }
   0x8   :  { %v78_v9 = vld [vmem:[%s1141_s1] sm:$0x3]  ;;  %167 = vmatpush.msra.mxu3 %v973_v5  ;;  %392 = vmatpush.msra.mxu2 %v973_v5  ;;  %vm149_vm5 = vcmask 254976   ;;  %s720_s27 = sshll.u32 %s1149_s9, 4  ;;  %s894_s28 = smov [#allocation5]   ;;  %s721_s27 = int_to_ptr.hbm [resolvable:$true] %s720_s27 }
   0x9   :  { %66 = vmatpush.msra.mxu0 %v36_v6  ;;  %98 = vmatpush.msra.mxu1 %v984_v7  ;;  %v1021_v10 = vld [vmem:[%s1145_s5] ss:$0 sm:$0xff]  ;;  %s729_s29 = sshll.u32 %s894_s28, 4  ;;  %s731_s3 = sshll.u32 %s1150_s10, 4  ;;  %s730_s29 = int_to_ptr.vmem [resolvable:$true] %s729_s29  ;;  %s732_s3 = int_to_ptr.hbm [resolvable:$true] %s731_s3 }
   0xa   :  { %747 = vmatmul.msk.f32.vlgmr.msra.gmra.mxu0 %vm44_vm0, %v34_v8  ;;  %749 = vmatmul.msk.f32.vlgmr.msra.gmra.mxu1 %vm44_vm0, %v78_v9  ;;  %v79_v16 = vld [vmem:[%s1142_s2] sm:$0x3] }
   0xb   :  { %168 = vmatpush.msra.mxu3 %v984_v7  ;;  %315 = vmatpush.msrb.mxu1 %v959_v2 }
   0xc   :  { %393 = vmatpush.msra.mxu2 %v984_v7  ;;  %532 = vmatpush.msrb.mxu0 %v959_v2 }
   0xd   :  { %240 = vmatpush.msrb.mxu3 %v959_v2  ;;  %316 = vmatpush.msrb.mxu1 %v965_v3 }
   0xe   :  { %533 = vmatpush.msrb.mxu0 %v965_v3 }
   0xf   :  { %241 = vmatpush.msrb.mxu3 %v965_v3  ;;  %317 = vmatpush.msrb.mxu1 %v973_v5 }
  0x10   :  { %534 = vmatpush.msrb.mxu0 %v973_v5 }
  0x11   :  { %242 = vmatpush.msrb.mxu3 %v973_v5  ;;  %318 = vmatpush.msrb.mxu1 %v984_v7 }
  0x12   :  { %535 = vmatpush.msrb.mxu0 %v984_v7 }
  0x13   :  { %243 = vmatpush.msrb.mxu3 %v984_v7  ;;  %606 = vmatpush.msra.mxu1 %v959_v2 }
  0x15   :  { %607 = vmatpush.msra.mxu1 %v965_v3 }
  0x17   :  { %608 = vmatpush.msra.mxu1 %v973_v5 }
  0x19   :  { %609 = vmatpush.msra.mxu1 %v984_v7 }
  0x87   :  { %v68_v11 = vpop.f32.mrf.mxu0  ;;  %v100_v12 = vpop.f32.mrf.mxu1 }
  0x88   :  { %v1024_v13 = vadd.f32 %v1021_v10, %v68_v11 }
  0x8a   :  { %v103_v14 = vadd.f32 %v100_v12, %v1024_v13 }
  0x8c   :  { %774 = vtanh.f32 %v103_v14  ;;  %v750_v17 = vmul.f32 -1.442695, %v103_v14 }
  0x8e   :  { %776 = vpow2.f32 %v750_v17 }
  0x92   :  { %v775_v15 = vpop.eup %774 }
  0x93   :  { %130 = vrot.lane.b32.xlu0 %v775_v15, %s890_s12 }
  0x94   :  { %v777_v18 = vpop.eup %776 }
  0x95   :  { %v107_v19 = vadd.f32 1.0, %v777_v18 }
  0x97   :  { %778 = vrcp.f32 %v107_v19  ;;  %v119_v25 = vand.u32 2147483648, %v107_v19  ;;  %vm113_vm2 = vweird.f32 %v107_v19  ;;  %v117_v26 = vand.u32 2147483647, %v107_v19 }
  0x99   :  { %v120_v28 = vor.u32 1.1754944e-38, %v119_v25  ;;  %vm118_vm4 = vcmp.eq.f32.partialorder %v117_v26, 8.507059e+37 }
  0x9b   :  { %125 = vrot.lane.b32.xlu0 %v79_v16, %s891_s15 }
  0x9d   :  { %v779_v20 = vpop.eup %778 }
  0x9e   :  { %v109_v21 = vmul.f32 %v779_v20, %v107_v19  ;;  %vm114_vm1 = vweird.f32 %v779_v20 }
  0x9f   :  { %vm115_vm3 = vmor %vm113_vm2, %vm114_vm1 }
  0xa0   :  { %v110_v22 = vsub.f32 1.0, %v109_v21 }
  0xa2   :  { %v111_v23 = vmul.f32 %v779_v20, %v110_v22 }
  0xa4   :  { %v112_v24 = vadd.f32 %v779_v20, %v111_v23 }
  0xa6   :  { %v116_v27 = vsel %vm115_vm3, %v779_v20, %v112_v24 }
  0xa7   :  { %v121_v30 = vsel %vm118_vm4, %v120_v28, %v116_v27 }
 0x105   :  { %v131_v29 = vpop.permute.xlu0 %130 }
 0x106   :  { %v133_v31 = vmul.f32 %v131_v29, %v121_v30 }
 0x108   :  { %135 = vrot.lane.b32.xlu1 %v133_v31, %s891_s15 }
 0x10d   :  { %v126_v32 = vpop.permute.xlu0 %125 }
 0x10e   :  { %v128_v33 = vmul.f32 %v126_v32, %v121_v30 }
 0x17a   :  { %v136_v34 = vpop.permute.xlu1 %135 }
 0x17b   :  { %v138_v35 = vadd.f32 %v136_v34, %v128_v33 }
 0x17d   :  { %780 = vtanh.f32 %v138_v35  ;;  %v198_v59 = vrot.slane %v138_v35, 6 }
 0x183   :  { %v781_v36 = vpop.eup %780 }
 0x184   :  { %141 = vrot.lane.b32.xlu1 %v781_v36, %s890_s12 }
 0x1f6   :  { %v142_v37 = vpop.permute.xlu1 %141 }
 0x1f7   :  { %v144_v38 = vmul.f32 %v142_v37, %v121_v30 }
 0x1f9   :  { %146 = vrot.lane.b32.xlu2 %v144_v38, %s891_s15 }
 0x253   :  { %v147_v39 = vpop.permute.xlu2 %146 }
 0x254   :  { %150 = vst.msk [vmem:[#allocation2] sm:$0x3] %vm149_vm5, %v147_v39  ;;  %751 = vmatmul.msk.f32.vlgmr.msra.gmra.mxu3 %vm44_vm0, %v147_v39 }
 0x255   :  { %458 = vmatpush.msra.mxu3 %v959_v2 }
 0x257   :  { %459 = vmatpush.msra.mxu3 %v965_v3 }
 0x259   :  { %460 = vmatpush.msra.mxu3 %v973_v5 }
 0x25b   :  { %461 = vmatpush.msra.mxu3 %v984_v7 }
 0x2d7   :  { %v170_v40 = vpop.f32.mrf.mxu3 }
 0x2d8   :  { %v174_v41 = vrot.slane %v170_v40, 6 }
 0x2da   :  { %v176_v42 = vadd.f32 %v174_v41, %v1024_v13 }
 0x2dc   :  { %782 = vtanh.f32 %v176_v42  ;;  %v752_v44 = vmul.f32 -1.442695, %v176_v42 }
 0x2de   :  { %784 = vpow2.f32 %v752_v44 }
 0x2e2   :  { %v783_v43 = vpop.eup %782 }
 0x2e3   :  { %202 = vrot.lane.b32.xlu2 %v783_v43, %s890_s12 }
 0x2e4   :  { %v785_v45 = vpop.eup %784 }
 0x2e5   :  { %v180_v46 = vadd.f32 1.0, %v785_v45 }
 0x2e7   :  { %786 = vrcp.f32 %v180_v46  ;;  %v192_v52 = vand.u32 2147483648, %v180_v46  ;;  %vm186_vm7 = vweird.f32 %v180_v46  ;;  %v190_v53 = vand.u32 2147483647, %v180_v46 }
 0x2e9   :  { %v193_v55 = vor.u32 1.1754944e-38, %v192_v52  ;;  %vm191_vm9 = vcmp.eq.f32.partialorder %v190_v53, 8.507059e+37 }
 0x2ed   :  { %v787_v47 = vpop.eup %786 }
 0x2ee   :  { %v182_v48 = vmul.f32 %v787_v47, %v180_v46  ;;  %vm187_vm6 = vweird.f32 %v787_v47 }
 0x2ef   :  { %vm188_vm8 = vmor %vm186_vm7, %vm187_vm6 }
 0x2f0   :  { %v183_v49 = vsub.f32 1.0, %v182_v48 }
 0x2f2   :  { %v184_v50 = vmul.f32 %v787_v47, %v183_v49 }
 0x2f4   :  { %v185_v51 = vadd.f32 %v787_v47, %v184_v50 }
 0x2f6   :  { %v189_v54 = vsel %vm188_vm8, %v787_v47, %v185_v51 }
 0x2f7   :  { %v194_v57 = vsel %vm191_vm9, %v193_v55, %v189_v54 }
 0x2f8   :  { %v200_v60 = vmul.f32 %v198_v59, %v194_v57 }
 0x33d   :  { %v203_v56 = vpop.permute.xlu2 %202 }
 0x33e   :  { %v205_v58 = vmul.f32 %v203_v56, %v194_v57 }
 0x340   :  { %207 = vrot.lane.b32.xlu0 %v205_v58, %s891_s15 }
 0x3b2   :  { %v208_v61 = vpop.permute.xlu0 %207 }
 0x3b3   :  { %v210_v62 = vadd.f32 %v208_v61, %v200_v60  ;;  %v35_v60 = vld [vmem:[%s1140_s0 + $0x8] sm:$0xff]  ;;  %s892_s0 = smov 96  }
 0x3b4   :  { %748 = vmatmul.msk.f32.gmra.mxu0 %vm44_vm0, %v35_v60 }
 0x3b5   :  { %788 = vtanh.f32 %v210_v62  ;;  %v273_v25 = vrot.slane %v210_v62, 6 }
 0x3bb   :  { %v789_v63 = vpop.eup %788 }
 0x3bc   :  { %213 = vrot.lane.b32.xlu1 %v789_v63, %s890_s12 }
 0x42e   :  { %v214_v0 = vpop.permute.xlu1 %213 }
 0x42f   :  { %v1045_v1 = vmul.f32 %v214_v0, %v194_v57 }
 0x431   :  { %v223_v2 = vrot.slane %v1045_v1, 2  ;;  %v71_v62 = vpop.f32.mrf.mxu0 }
 0x432   :  { %v1073_v63 = vadd.f32 %v1021_v10, %v71_v62 }
 0x433   :  { %224 = vrot.lane.b32.xlu2 %v223_v2, %s891_s15 }
 0x48d   :  { %v225_v3 = vpop.permute.xlu2 %224 }
 0x48e   :  { %753 = vmatmul.msk.f32.vlgmr.msrb.gmra.mxu3 %vm44_vm0, %v225_v3 }
 0x511   :  { %v245_v4 = vpop.f32.mrf.mxu3 }
 0x512   :  { %v249_v5 = vrot.slane %v245_v4, 4 }
 0x514   :  { %v251_v6 = vadd.f32 %v249_v5, %v1024_v13 }
 0x516   :  { %790 = vtanh.f32 %v251_v6  ;;  %v754_v8 = vmul.f32 -1.442695, %v251_v6 }
 0x518   :  { %792 = vpow2.f32 %v754_v8 }
 0x51c   :  { %v791_v7 = vpop.eup %790 }
 0x51d   :  { %277 = vrot.lane.b32.xlu0 %v791_v7, %s890_s12 }
 0x51e   :  { %v793_v9 = vpop.eup %792 }
 0x51f   :  { %v255_v11 = vadd.f32 1.0, %v793_v9 }
 0x521   :  { %794 = vrcp.f32 %v255_v11  ;;  %v267_v18 = vand.u32 2147483648, %v255_v11  ;;  %vm261_vm11 = vweird.f32 %v255_v11  ;;  %v265_v19 = vand.u32 2147483647, %v255_v11 }
 0x523   :  { %v268_v21 = vor.u32 1.1754944e-38, %v267_v18  ;;  %vm266_vm13 = vcmp.eq.f32.partialorder %v265_v19, 8.507059e+37 }
 0x527   :  { %v795_v12 = vpop.eup %794 }
 0x528   :  { %v257_v14 = vmul.f32 %v795_v12, %v255_v11  ;;  %vm262_vm10 = vweird.f32 %v795_v12 }
 0x529   :  { %vm263_vm12 = vmor %vm261_vm11, %vm262_vm10 }
 0x52a   :  { %v258_v15 = vsub.f32 1.0, %v257_v14 }
 0x52c   :  { %v259_v16 = vmul.f32 %v795_v12, %v258_v15 }
 0x52e   :  { %v260_v17 = vadd.f32 %v795_v12, %v259_v16 }
 0x530   :  { %v264_v20 = vsel %vm263_vm12, %v795_v12, %v260_v17 }
 0x531   :  { %v269_v23 = vsel %vm266_vm13, %v268_v21, %v264_v20 }
 0x532   :  { %v275_v26 = vmul.f32 %v273_v25, %v269_v23 }
 0x58f   :  { %v278_v22 = vpop.permute.xlu0 %277 }
 0x590   :  { %v280_v24 = vmul.f32 %v278_v22, %v269_v23 }
 0x592   :  { %282 = vrot.lane.b32.xlu1 %v280_v24, %s891_s15 }
 0x604   :  { %v283_v27 = vpop.permute.xlu1 %282 }
 0x605   :  { %v285_v28 = vadd.f32 %v283_v27, %v275_v26 }
 0x607   :  { %796 = vtanh.f32 %v285_v28  ;;  %v348_v52 = vrot.slane %v285_v28, 6 }
 0x60d   :  { %v797_v29 = vpop.eup %796 }
 0x60e   :  { %288 = vrot.lane.b32.xlu2 %v797_v29, %s890_s12 }
 0x668   :  { %v289_v30 = vpop.permute.xlu2 %288 }
 0x669   :  { %v1054_v31 = vmul.f32 %v289_v30, %v269_v23 }
 0x66b   :  { %v298_v32 = vrot.slane %v1054_v31, 4 }
 0x66d   :  { %299 = vrot.lane.b32.xlu0 %v298_v32, %s891_s15 }
 0x6df   :  { %v300_v33 = vpop.permute.xlu0 %299 }
 0x6e0   :  { %755 = vmatmul.msk.f32.vlgmr.msrb.gmra.mxu1 %vm44_vm0, %v300_v33 }
 0x75d   :  { %v320_v34 = vpop.f32.mrf.mxu1 }
 0x75e   :  { %v324_v35 = vrot.slane %v320_v34, 2 }
 0x760   :  { %v326_v36 = vadd.f32 %v324_v35, %v1024_v13 }
 0x762   :  { %798 = vtanh.f32 %v326_v36  ;;  %v756_v38 = vmul.f32 -1.442695, %v326_v36 }
 0x764   :  { %800 = vpow2.f32 %v756_v38 }
 0x768   :  { %v799_v37 = vpop.eup %798 }
 0x769   :  { %352 = vrot.lane.b32.xlu1 %v799_v37, %s890_s12 }
 0x76a   :  { %v801_v39 = vpop.eup %800 }
 0x76b   :  { %v330_v40 = vadd.f32 1.0, %v801_v39 }
 0x76d   :  { %802 = vrcp.f32 %v330_v40  ;;  %v342_v46 = vand.u32 2147483648, %v330_v40  ;;  %vm336_vm15 = vweird.f32 %v330_v40  ;;  %v340_v47 = vand.u32 2147483647, %v330_v40 }
 0x76f   :  { %v343_v48 = vor.u32 1.1754944e-38, %v342_v46  ;;  %vm341_vm2 = vcmp.eq.f32.partialorder %v340_v47, 8.507059e+37 }
 0x773   :  { %v803_v41 = vpop.eup %802 }
 0x774   :  { %v332_v42 = vmul.f32 %v803_v41, %v330_v40  ;;  %vm337_vm14 = vweird.f32 %v803_v41 }
 0x775   :  { %vm338_vm1 = vmor %vm336_vm15, %vm337_vm14 }
 0x776   :  { %v333_v43 = vsub.f32 1.0, %v332_v42 }
 0x778   :  { %v334_v44 = vmul.f32 %v803_v41, %v333_v43 }
 0x77a   :  { %v335_v45 = vadd.f32 %v803_v41, %v334_v44 }
 0x77c   :  { %v339_v13 = vsel %vm338_vm1, %v803_v41, %v335_v45 }
 0x77d   :  { %v344_v50 = vsel %vm341_vm2, %v343_v48, %v339_v13 }
 0x77e   :  { %v350_v53 = vmul.f32 %v348_v52, %v344_v50 }
 0x7db   :  { %v353_v49 = vpop.permute.xlu1 %352 }
 0x7dc   :  { %v355_v51 = vmul.f32 %v353_v49, %v344_v50 }
 0x7de   :  { %357 = vrot.lane.b32.xlu2 %v355_v51, %s891_s15 }
 0x838   :  { %v358_v54 = vpop.permute.xlu2 %357 }
 0x839   :  { %v360_v55 = vadd.f32 %v358_v54, %v350_v53 }
 0x83b   :  { %804 = vtanh.f32 %v360_v55  ;;  %v420_v20 = vrot.slane %v360_v55, 6 }
 0x841   :  { %v805_v56 = vpop.eup %804 }
 0x842   :  { %363 = vrot.lane.b32.xlu0 %v805_v56, %s890_s12 }
 0x8b4   :  { %v364_v57 = vpop.permute.xlu0 %363 }
 0x8b5   :  { %v1063_v58 = vmul.f32 %v364_v57, %v344_v50 }
 0x8b7   :  { %v373_v59 = vrot.slane %v1063_v58, 6 }
 0x8b9   :  { %374 = vrot.lane.b32.xlu1 %v373_v59, %s891_s15 }
 0x92b   :  { %v375_v61 = vpop.permute.xlu1 %374 }
 0x92c   :  { %757 = vmatmul.msk.f32.vlgmr.msra.gmra.mxu2 %vm44_vm0, %v375_v61 }
 0x9af   :  { %v395_v0 = vpop.f32.mrf.mxu2 }
 0x9b0   :  { %v398_v2 = vadd.f32 %v395_v0, %v1073_v63 }
 0x9b2   :  { %806 = vtanh.f32 %v398_v2  ;;  %v758_v4 = vmul.f32 -1.442695, %v398_v2 }
 0x9b4   :  { %808 = vpow2.f32 %v758_v4 }
 0x9b8   :  { %v807_v3 = vpop.eup %806 }
 0x9b9   :  { %424 = vrot.lane.b32.xlu2 %v807_v3, %s890_s12 }
 0x9ba   :  { %v809_v5 = vpop.eup %808 }
 0x9bb   :  { %v402_v6 = vadd.f32 1.0, %v809_v5 }
 0x9bd   :  { %810 = vrcp.f32 %v402_v6  ;;  %v414_v10 = vand.u32 2147483648, %v402_v6  ;;  %vm408_vm4 = vweird.f32 %v402_v6  ;;  %v412_v14 = vand.u32 2147483647, %v402_v6 }
 0x9bf   :  { %v415_v16 = vor.u32 1.1754944e-38, %v414_v10  ;;  %vm413_vm7 = vcmp.eq.f32.partialorder %v412_v14, 8.507059e+37 }
 0x9c3   :  { %v811_v7 = vpop.eup %810 }
 0x9c4   :  { %v404_v8 = vmul.f32 %v811_v7, %v402_v6  ;;  %vm409_vm3 = vweird.f32 %v811_v7 }
 0x9c5   :  { %vm410_vm6 = vmor %vm408_vm4, %vm409_vm3  ;;  %vm221_vm4 = vcmask 257026  }
 0x9c6   :  { %v405_v9 = vsub.f32 1.0, %v404_v8 }
 0x9c8   :  { %v406_v11 = vmul.f32 %v811_v7, %v405_v9 }
 0x9ca   :  { %v407_v12 = vadd.f32 %v811_v7, %v406_v11 }
 0x9cc   :  { %v411_v15 = vsel %vm410_vm6, %v811_v7, %v407_v12  ;;  %vm296_vm6 = vcmask 259076  }
 0x9cd   :  { %v416_v18 = vsel %vm413_vm7, %v415_v16, %v411_v15  ;;  %vm371_vm7 = vcmask 261126  }
 0x9ce   :  { %v422_v21 = vmul.f32 %v420_v20, %v416_v18 }
 0xa13   :  { %v425_v17 = vpop.permute.xlu2 %424 }
 0xa14   :  { %v427_v19 = vmul.f32 %v425_v17, %v416_v18 }
 0xa16   :  { %429 = vrot.lane.b32.xlu0 %v427_v19, %s891_s15 }
 0xa88   :  { %v430_v22 = vpop.permute.xlu0 %429 }
 0xa89   :  { %v432_v23 = vadd.f32 %v430_v22, %v422_v21 }
 0xa8b   :  { %812 = vtanh.f32 %v432_v23  ;;  %v491_v13 = vrot.slane %v432_v23, 6 }
 0xa91   :  { %v813_v24 = vpop.eup %812 }
 0xa92   :  { %435 = vrot.lane.b32.xlu1 %v813_v24, %s890_s12 }
 0xb04   :  { %v436_v25 = vpop.permute.xlu1 %435 }
 0xb05   :  { %v438_v26 = vmul.f32 %v436_v25, %v416_v18 }
 0xb07   :  { %440 = vrot.lane.b32.xlu2 %v438_v26, %s891_s15 }
 0xb61   :  { %v441_v27 = vpop.permute.xlu2 %440 }
 0xb62   :  { %443 = vst.msk [vmem:[#allocation2 + $0x8] sm:$0x3] %vm149_vm5, %v441_v27  ;;  %759 = vmatmul.msk.f32.vlgmr.msra.gmra.mxu3 %vm44_vm0, %v441_v27 }
 0xbe5   :  { %v463_v28 = vpop.f32.mrf.mxu3 }
 0xbe6   :  { %v467_v29 = vrot.slane %v463_v28, 6 }
 0xbe8   :  { %v469_v30 = vadd.f32 %v467_v29, %v1073_v63 }
 0xbea   :  { %814 = vtanh.f32 %v469_v30  ;;  %v760_v33 = vmul.f32 -1.442695, %v469_v30 }
 0xbec   :  { %816 = vpow2.f32 %v760_v33 }
 0xbf0   :  { %v815_v32 = vpop.eup %814 }
 0xbf1   :  { %495 = vrot.lane.b32.xlu0 %v815_v32, %s890_s12 }
 0xbf2   :  { %v817_v34 = vpop.eup %816 }
 0xbf3   :  { %v473_v35 = vadd.f32 1.0, %v817_v34 }
 0xbf5   :  { %818 = vrcp.f32 %v473_v35  ;;  %v485_v41 = vand.u32 2147483648, %v473_v35  ;;  %vm479_vm8 = vweird.f32 %v473_v35  ;;  %v483_v42 = vand.u32 2147483647, %v473_v35 }
 0xbf7   :  { %v486_v44 = vor.u32 1.1754944e-38, %v485_v41  ;;  %vm484_vm10 = vcmp.eq.f32.partialorder %v483_v42, 8.507059e+37 }
 0xbfb   :  { %v819_v36 = vpop.eup %818 }
 0xbfc   :  { %v475_v37 = vmul.f32 %v819_v36, %v473_v35  ;;  %vm480_vm5 = vweird.f32 %v819_v36 }
 0xbfd   :  { %vm481_vm9 = vmor %vm479_vm8, %vm480_vm5 }
 0xbfe   :  { %v476_v38 = vsub.f32 1.0, %v475_v37 }
 0xc00   :  { %v477_v39 = vmul.f32 %v819_v36, %v476_v38 }
 0xc02   :  { %v478_v40 = vadd.f32 %v819_v36, %v477_v39 }
 0xc04   :  { %v482_v43 = vsel %vm481_vm9, %v819_v36, %v478_v40 }
 0xc05   :  { %v487_v46 = vsel %vm484_vm10, %v486_v44, %v482_v43 }
 0xc06   :  { %v493_v48 = vmul.f32 %v491_v13, %v487_v46 }
 0xc63   :  { %v496_v45 = vpop.permute.xlu0 %495 }
 0xc64   :  { %v498_v47 = vmul.f32 %v496_v45, %v487_v46 }
 0xc66   :  { %500 = vrot.lane.b32.xlu1 %v498_v47, %s891_s15 }
 0xcd8   :  { %v501_v49 = vpop.permute.xlu1 %500 }
 0xcd9   :  { %v503_v50 = vadd.f32 %v501_v49, %v493_v48 }
 0xcdb   :  { %820 = vtanh.f32 %v503_v50  ;;  %v565_v15 = vrot.slane %v503_v50, 6  ;;  %v674_v50 = vld [vmem:[%s1146_s6 + $0x18] sm:$0xff] }
 0xcdc   :  { %697 = vmatpush.msrb.mxu2 %v674_v50 }
 0xce1   :  { %v821_v51 = vpop.eup %820 }
 0xce2   :  { %506 = vrot.lane.b32.xlu2 %v821_v51, %s890_s12  ;;  %v673_v51 = vld [vmem:[%s1146_s6 + $0x10] sm:$0xff] }
 0xce3   :  { %698 = vmatpush.msrb.mxu2 %v673_v51 }
 0xd3c   :  { %v507_v52 = vpop.permute.xlu2 %506 }
 0xd3d   :  { %v509_v53 = vmul.f32 %v507_v52, %v487_v46  ;;  %v672_v52 = vld [vmem:[%s1146_s6 + $0x8] sm:$0xff] }
 0xd3e   :  { %699 = vmatpush.msrb.mxu2 %v672_v52 }
 0xd3f   :  { %v515_v54 = vrot.slane %v509_v53, 2 }
 0xd41   :  { %516 = vrot.lane.b32.xlu0 %v515_v54, %s891_s15 }
 0xdb3   :  { %v517_v55 = vpop.permute.xlu0 %516 }
 0xdb4   :  { %761 = vmatmul.msk.f32.vlgmr.msrb.gmra.mxu0 %vm44_vm0, %v517_v55 }
 0xe31   :  { %v537_v56 = vpop.f32.mrf.mxu0 }
 0xe32   :  { %v541_v57 = vrot.slane %v537_v56, 4 }
 0xe34   :  { %v543_v59 = vadd.f32 %v541_v57, %v1073_v63 }
 0xe36   :  { %822 = vtanh.f32 %v543_v59  ;;  %v762_v61 = vmul.f32 -1.442695, %v543_v59 }
 0xe38   :  { %824 = vpow2.f32 %v762_v61 }
 0xe3c   :  { %v823_v60 = vpop.eup %822 }
 0xe3d   :  { %569 = vrot.lane.b32.xlu1 %v823_v60, %s890_s12  ;;  %v773_v60 = vld [vmem:[%s1147_s7] ss:$0 sm:$0xff] }
 0xe3e   :  { %v825_v62 = vpop.eup %824 }
 0xe3f   :  { %v547_v0 = vadd.f32 1.0, %v825_v62 }
 0xe41   :  { %826 = vrcp.f32 %v547_v0  ;;  %v559_v7 = vand.u32 2147483648, %v547_v0  ;;  %vm553_vm12 = vweird.f32 %v547_v0  ;;  %v557_v8 = vand.u32 2147483647, %v547_v0 }
 0xe43   :  { %v560_v11 = vor.u32 1.1754944e-38, %v559_v7  ;;  %vm558_vm14 = vcmp.eq.f32.partialorder %v557_v8, 8.507059e+37 }
 0xe47   :  { %v827_v2 = vpop.eup %826 }
 0xe48   :  { %v549_v3 = vmul.f32 %v827_v2, %v547_v0  ;;  %vm554_vm11 = vweird.f32 %v827_v2 }
 0xe49   :  { %vm555_vm13 = vmor %vm553_vm12, %vm554_vm11 }
 0xe4a   :  { %v550_v4 = vsub.f32 1.0, %v549_v3 }
 0xe4c   :  { %v551_v5 = vmul.f32 %v827_v2, %v550_v4 }
 0xe4e   :  { %v552_v6 = vadd.f32 %v827_v2, %v551_v5 }
 0xe50   :  { %v556_v9 = vsel %vm555_vm13, %v827_v2, %v552_v6 }
 0xe51   :  { %v561_v10 = vsel %vm558_vm14, %v560_v11, %v556_v9 }
 0xe52   :  { %v567_v16 = vmul.f32 %v565_v15, %v561_v10 }
 0xeaf   :  { %v570_v12 = vpop.permute.xlu1 %569 }
 0xeb0   :  { %v572_v14 = vmul.f32 %v570_v12, %v561_v10 }
 0xeb2   :  { %574 = vrot.lane.b32.xlu2 %v572_v14, %s891_s15 }
 0xf0c   :  { %v575_v17 = vpop.permute.xlu2 %574 }
 0xf0d   :  { %v577_v18 = vadd.f32 %v575_v17, %v567_v16 }
 0xf0f   :  { %828 = vtanh.f32 %v577_v18  ;;  %v639_v44 = vrot.slane %v577_v18, 6 }
 0xf15   :  { %v829_v19 = vpop.eup %828 }
 0xf16   :  { %580 = vrot.lane.b32.xlu0 %v829_v19, %s890_s12 }
 0xf88   :  { %v581_v20 = vpop.permute.xlu0 %580 }
 0xf89   :  { %v583_v21 = vmul.f32 %v581_v20, %v561_v10 }
 0xf8b   :  { %v589_v22 = vrot.slane %v583_v21, 4 }
 0xf8d   :  { %590 = vrot.lane.b32.xlu1 %v589_v22, %s891_s15 }
 0xfff   :  { %v591_v23 = vpop.permute.xlu1 %590 }
0x1000   :  { %763 = vmatmul.msk.f32.vlgmr.msra.gmra.mxu1 %vm44_vm0, %v591_v23 }
0x107d   :  { %v611_v24 = vpop.f32.mrf.mxu1 }
0x107e   :  { %v615_v25 = vrot.slane %v611_v24, 2 }
0x1080   :  { %v617_v26 = vadd.f32 %v615_v25, %v1073_v63 }
0x1082   :  { %830 = vtanh.f32 %v617_v26  ;;  %v764_v28 = vmul.f32 -1.442695, %v617_v26 }
0x1084   :  { %832 = vpow2.f32 %v764_v28 }
0x1088   :  { %v831_v27 = vpop.eup %830 }
0x1089   :  { %643 = vrot.lane.b32.xlu2 %v831_v27, %s890_s12 }
0x108a   :  { %v833_v29 = vpop.eup %832 }
0x108b   :  { %v621_v30 = vadd.f32 1.0, %v833_v29 }
0x108d   :  { %834 = vrcp.f32 %v621_v30  ;;  %v633_v63 = vand.u32 2147483648, %v621_v30  ;;  %vm627_vm1 = vweird.f32 %v621_v30  ;;  %v631_v37 = vand.u32 2147483647, %v621_v30 }
0x108f   :  { %v634_v39 = vor.u32 1.1754944e-38, %v633_v63  ;;  %vm632_vm3 = vcmp.eq.f32.partialorder %v631_v37, 8.507059e+37 }
0x1091   :  { %218 = vrot.lane.b32.xlu2 %v1045_v1, %s891_s15 }
0x1093   :  { %v835_v32 = vpop.eup %834 }
0x1094   :  { %v623_v33 = vmul.f32 %v835_v32, %v621_v30  ;;  %vm628_vm15 = vweird.f32 %v835_v32 }
0x1095   :  { %vm629_vm2 = vmor %vm627_vm1, %vm628_vm15 }
0x1096   :  { %v624_v34 = vsub.f32 1.0, %v623_v33 }
0x1098   :  { %v625_v35 = vmul.f32 %v835_v32, %v624_v34 }
0x1099   :  { %511 = vrot.lane.b32.xlu2 %v509_v53, %s891_s15 }
0x109a   :  { %v626_v36 = vadd.f32 %v835_v32, %v625_v35 }
0x109c   :  { %v630_v38 = vsel %vm629_vm2, %v835_v32, %v626_v36 }
0x109d   :  { %v635_v40 = vsel %vm632_vm3, %v634_v39, %v630_v38 }
0x109e   :  { %v641_v45 = vmul.f32 %v639_v44, %v635_v40 }
0x10e3   :  { %v644_v1 = vpop.permute.xlu2 %643 }
0x10e4   :  { %v646_v41 = vmul.f32 %v644_v1, %v635_v40 }
0x10e6   :  { %648 = vrot.lane.b32.xlu0 %v646_v41, %s891_s15 }
0x10eb   :  { %v219_v42 = vpop.permute.xlu2 %218 }
0x10ec   :  { %222 = vst.msk [vmem:[#allocation2] sm:$0xc] %vm221_vm4, %v219_v42 }
0x10ee   :  { %293 = vrot.lane.b32.xlu0 %v1054_v31, %s891_s15 }
0x10f3   :  { %v512_v43 = vpop.permute.xlu2 %511 }
0x10f4   :  { %514 = vst.msk [vmem:[#allocation2 + $0x8] sm:$0xc] %vm221_vm4, %v512_v43 }
0x10f6   :  { %585 = vrot.lane.b32.xlu0 %v583_v21, %s891_s15 }
0x1158   :  { %v649_v46 = vpop.permute.xlu0 %648 }
0x1159   :  { %v651_v47 = vadd.f32 %v649_v46, %v641_v45 }
0x115b   :  { %836 = vtanh.f32 %v651_v47  ;;  %665 = vrot.lane.b32.xlu2 %v651_v47, %s892_s0 }
0x1160   :  { %v294_v13 = vpop.permute.xlu0 %293 }
0x1161   :  { %v837_v48 = vpop.eup %836  ;;  %297 = vst.msk [vmem:[#allocation2] sm:$0x30] %vm296_vm6, %v294_v13 }
0x1162   :  { %654 = vrot.lane.b32.xlu1 %v837_v48, %s890_s12 }
0x1168   :  { %v586_v49 = vpop.permute.xlu0 %585 }
0x1169   :  { %588 = vst.msk [vmem:[#allocation2 + $0x8] sm:$0x30] %vm296_vm6, %v586_v49 }
0x116a   :  { %368 = vrot.lane.b32.xlu1 %v1063_v58, %s891_s15  ;;  %v671_v58 = vld [vmem:[%s1146_s6] sm:$0xff]  ;;  %s893_s6 = smov [#allocation3]  }
0x116b   :  { %700 = vmatpush.msrb.mxu2 %v671_v58  ;;  %s718_s24 = sshll.u32 %s893_s6, 4  ;;  %s719_s24 = int_to_ptr.vmem [resolvable:$true] %s718_s24 }
0x11b5   :  { %v666_v31 = vpop.permute.xlu2 %665 }
0x11b6   :  { %668 = vst.msk [vmem:[#allocation5 - $0x6] sm:$0xc0] %vm371_vm7, %v666_v31 }
0x11b7   :  { %734 = dma.vmem_to_hbm [thread:$0]  %s730_s29, 32, %s732_s3, [#allocation6]  }
0x11d4   :  { %v655_v53 = vpop.permute.xlu1 %654 }
0x11d5   :  { %v657_v54 = vmul.f32 %v655_v53, %v635_v40 }
0x11d7   :  { %659 = vrot.lane.b32.xlu1 %v657_v54, %s891_s15 }
0x11dc   :  { %v369_v55 = vpop.permute.xlu1 %368 }
0x11dd   :  { %372 = vst.msk [vmem:[#allocation2] sm:$0xc0] %vm371_vm7, %v369_v55 }
0x11e4   :  { %v669_v56 = vld [vmem:[#allocation2] sm:$0xff] }
0x11e5   :  { %765 = vmatmul.msk.f32.vlgmr.msrb.gmra.mxu2 %vm44_vm0, %v669_v56 }
0x1249   :  { %v660_v57 = vpop.permute.xlu1 %659 }
0x124a   :  { %662 = vst.msk [vmem:[#allocation2 + $0x8] sm:$0xc0] %vm371_vm7, %v660_v57 }
0x124b   :  { %663 = vst.msk [vmem:[#allocation3 - $0x6] sm:$0xc0] %vm371_vm7, %v660_v57 }
0x124c   :  { %723 = dma.vmem_to_hbm [thread:$0]  %s719_s24, 32, %s721_s27, [#allocation4]  }
0x1251   :  { %v670_v59 = vld [vmem:[#allocation2 + $0x8] sm:$0xff] }
0x1252   :  { %766 = vmatmul.msk.f32.gmra.mxu2 %vm44_vm0, %v670_v59  ;;  %vm708_vm0 = vcmask 80896  }
0x1268   :  { %v702_v61 = vpop.f32.mrf.mxu2 }
0x1269   :  { %v703_v62 = vadd.f32 %v773_v60, %v702_v61 }
0x126b   :  { %709 = vst.msk [vmem:[%s1148_s8] sm:$0xff] %vm708_vm0, %v703_v62 }
0x12d5   :  { %v705_v0 = vpop.f32.mrf.mxu2 }
0x12d6   :  { %v706_v2 = vadd.f32 %v773_v60, %v705_v0 }
0x12d8   :  { %710 = vst.msk [vmem:[%s1148_s8 + $0x8] sm:$0xff] %vm708_vm0, %v706_v2 }
0x12d9   :  { %886 = dma.done.wait [#allocation4], 32  }
0x12da   :  { %887 = vsyncadd [#allocation4], 4294967264 }
0x12db   :  { %888 = dma.done.wait [#allocation6], 32  }
0x12dc   :  { %889 = vsyncadd [#allocation6], 4294967264 }
0x12dd   :  { %745 = vsyncpa [#allocation4], 1 }
0x12de   :  { %746 = vsyncpa [#allocation6], 1 }

</bundles_post_ra>
